<compile_context>
chip_gen: v5e
topology: v5e:2x2
jax: 0.10.0
libtpu: 0.0.40
codegen_flags: <defaults>
</compile_context>

<pallas_src>
import jax
import jax.numpy as jnp
from jax.experimental import pallas as pl
from jax.experimental.pallas import tpu as pltpu

EPS = 1e-12  # torch.nn.functional.normalize default eps


def _round_up(x: int, m: int) -> int:
    return ((x + m - 1) // m) * m


def _futureshot_kernel(x_ref, w_ref, b_ref, cls_t_ref, out_ref, emb_ref):
    # Encoder + normalization only once per batch tile (first class step);
    # the normalized embedding is cached in VMEM scratch for later class tiles.
    @pl.when(pl.program_id(1) == 0)
    def _():
        emb = jnp.dot(x_ref[...], w_ref[...], preferred_element_type=jnp.float32)
        emb = emb + b_ref[...]  # b_ref is [1, E], broadcasts over the batch tile
        # L2 normalize along dim=1: rsqrt goes to the EUP; max(sumsq, eps^2)
        # reproduces torch.nn.functional.normalize's max(norm, eps) clamp.
        sumsq = jnp.sum(emb * emb, axis=-1, keepdims=True)
        emb_ref[...] = emb * jax.lax.rsqrt(jnp.maximum(sumsq, EPS * EPS))

    # Logits for this (batch tile, class tile): [tb, E] @ [E, tc].
    out_ref[...] = jnp.dot(
        emb_ref[...], cls_t_ref[...], preferred_element_type=jnp.float32
    ).astype(out_ref.dtype)


def futureshot_forward(
    x, w_enc, b_enc, class_emb, *, block_b: int = 128, block_c: int = 512
):
    B, D_in = x.shape
    E = w_enc.shape[1]
    C = class_emb.shape[0]

    # Pre-normalize class embeddings once (cheap O(C*E) XLA op) and transpose
    # to [E, C] so the kernel's logits matmul contracts on E directly.
    cls_sumsq = jnp.sum(class_emb * class_emb, axis=1, keepdims=True)
    cls_t = (class_emb * jax.lax.rsqrt(jnp.maximum(cls_sumsq, EPS * EPS))).T  # [E, C]

    # Class tile: multiple of 128 (lane-dense, unmasked stores); pad C to a
    # multiple of the tile with zero columns (zero logits, sliced off below).
    tc = _round_up(min(block_c, max(C, 1)), 128)
    Cp = _round_up(C, tc)
    if Cp != C:
        cls_t = jnp.pad(cls_t, ((0, 0), (0, Cp - C)))

    # Batch tile: second-last dim must be a multiple of 8; pad B to the tile.
    tb = min(block_b, _round_up(B, 8))
    Bp = _round_up(B, tb)
    xp = jnp.pad(x, ((0, Bp - B), (0, 0))) if Bp != B else x

    b2d = b_enc.reshape(1, E)

    out = pl.pallas_call(
        _futureshot_kernel,
        out_shape=jax.ShapeDtypeStruct((Bp, Cp), jnp.float32),
        grid=(Bp // tb, Cp // tc),
        in_specs=[
            pl.BlockSpec((tb, D_in), lambda i, j: (i, 0)),   # x: tiled over batch
            pl.BlockSpec((D_in, E), lambda i, j: (0, 0)),    # W: resident
            pl.BlockSpec((1, E), lambda i, j: (0, 0)),       # b: resident
            pl.BlockSpec((E, tc), lambda i, j: (0, j)),      # cls^T: tiled over C
        ],
        out_specs=pl.BlockSpec((tb, tc), lambda i, j: (i, j)),
        scratch_shapes=[pltpu.VMEM((tb, E), jnp.float32)],   # cached normalized emb
        compiler_params=pltpu.CompilerParams(
            # batch -> megacore split; class axis reuses the emb scratch.
            dimension_semantics=("parallel", "arbitrary"),
        ),
    )(xp, w_enc, b2d, cls_t)

    return out[:B, :C]


def futureshot_reference(x, w_enc, b_enc, class_emb):
    emb = x @ w_enc + b_enc[None, :]
    emb = emb / jnp.maximum(jnp.linalg.norm(emb, axis=1, keepdims=True), EPS)
    cls = class_emb / jnp.maximum(
        jnp.linalg.norm(class_emb, axis=1, keepdims=True), EPS
    )
    return emb @ cls.T


if __name__ == "__main__":
    key = jax.random.PRNGKey(0)
    k_x, k_w, k_b, k_c = jax.random.split(key, 4)

    # batch, input features, embedding_dim, num_classes
    B, D_in, E, C = 32, 32, 32, 200

    x = jax.random.normal(k_x, (B, D_in), dtype=jnp.float32)
    # Deterministic synthetic "parameters" (no checkpoint load).
    w_enc = jax.random.normal(k_w, (D_in, E), dtype=jnp.float32) * 0.1
    b_enc = jax.random.normal(k_b, (E,), dtype=jnp.float32) * 0.01
    class_emb = jax.random.normal(k_c, (C, E), dtype=jnp.float32)

    # Small tiles so the toy shapes exercise a multi-step (batch x class) grid.
    out = futureshot_forward(x, w_enc, b_enc, class_emb, block_b=8, block_c=128)
    out = jax.block_until_ready(out)

    ref = futureshot_reference(x, w_enc, b_enc, class_emb)
    assert out.shape == (B, C)
    assert jnp.allclose(out, ref, atol=1e-5, rtol=1e-5), "mismatch vs reference"

    print("KERNEL_OK")
</pallas_src>

<mosaic_0001>
module attributes {stable_mosaic.version = 11 : i64} {
  func.func @_futureshot_kernel(%arg0: i32, %arg1: i32, %arg2: memref<8x32xf32, #tpu.memory_space<vmem>>, %arg3: memref<32x32xf32, #tpu.memory_space<vmem>>, %arg4: memref<1x32xf32, #tpu.memory_space<vmem>>, %arg5: memref<32x128xf32, #tpu.memory_space<vmem>>, %arg6: memref<8x128xf32, #tpu.memory_space<vmem>>, %arg7: memref<8x32xf32, #tpu.memory_space<vmem>>) attributes {dimension_semantics = [#tpu.dimension_semantics<parallel>, #tpu.dimension_semantics<arbitrary>], iteration_bounds = array<i64: 4, 2>, scalar_prefetch = 0 : i64, scratch_operands = 1 : i64, tpu.core_type = #tpu.core_type<tc>, window_params = [{transform_indices = @transform_0, window_bounds = array<i64: 8, 32>}, {pipeline_mode = #tpu.pipeline_mode<synchronous>, transform_indices = @transform_1, window_bounds = array<i64: 32, 32>}, {pipeline_mode = #tpu.pipeline_mode<synchronous>, transform_indices = @transform_2, window_bounds = array<i64: 1, 32>}, {transform_indices = @transform_3, window_bounds = array<i64: 32, 128>}, {transform_indices = @transform_4, window_bounds = array<i64: 8, 128>}]} {
    %c0_i32 = arith.constant 0 : i32
    %0 = arith.cmpi eq, %arg1, %c0_i32 : i32
    %1 = arith.extui %0 : i1 to i32
    %c0_i32_0 = arith.constant 0 : i32
    %2 = arith.cmpi ne, %1, %c0_i32_0 : i32
    scf.if %2 {
      %c0_6 = arith.constant 0 : index
      %c0_7 = arith.constant 0 : index
      %7 = vector.load %arg2[%c0_6, %c0_7] : memref<8x32xf32, #tpu.memory_space<vmem>>, vector<8x32xf32>
      %c0_8 = arith.constant 0 : index
      %c0_9 = arith.constant 0 : index
      %8 = vector.load %arg3[%c0_8, %c0_9] : memref<32x32xf32, #tpu.memory_space<vmem>>, vector<32x32xf32>
      %cst_10 = arith.constant dense<0.000000e+00> : vector<8x32xf32>
      %9 = tpu.matmul %7, %8, %cst_10 {dimension_numbers = #tpu.dot_dimension_numbers<[1], [0], [0], [1], [0, 0, 1, 1], [], []>} : vector<8x32xf32>, vector<32x32xf32>, vector<8x32xf32> -> vector<8x32xf32>
      %c0_11 = arith.constant 0 : index
      %c0_12 = arith.constant 0 : index
      %10 = vector.load %arg4[%c0_11, %c0_12] : memref<1x32xf32, #tpu.memory_space<vmem>>, vector<1x32xf32>
      %11 = vector.broadcast %10 : vector<1x32xf32> to vector<8x32xf32>
      %12 = arith.addf %9, %11 : vector<8x32xf32>
      %13 = arith.mulf %12, %12 : vector<8x32xf32>
      %cst_13 = arith.constant dense<0.000000e+00> : vector<8xf32>
      %14 = vector.multi_reduction <add>, %13, %cst_13 [1] : vector<8x32xf32> to vector<8xf32>
      %15 = vector.shape_cast %14 : vector<8xf32> to vector<8x1xf32>
      %cst_14 = arith.constant 1.000000e-24 : f32
      %16 = vector.broadcast %cst_14 : f32 to vector<8x1xf32>
      %17 = arith.maximumf %15, %16 : vector<8x1xf32>
      %18 = math.rsqrt %17 : vector<8x1xf32>
      %19 = vector.broadcast %18 : vector<8x1xf32> to vector<8x32xf32>
      %20 = arith.mulf %12, %19 : vector<8x32xf32>
      %c0_15 = arith.constant 0 : index
      %c0_16 = arith.constant 0 : index
      %21 = vector.load %arg7[%c0_15, %c0_16] : memref<8x32xf32, #tpu.memory_space<vmem>>, vector<8x32xf32>
      tpu.vector_store %arg7[%c0_15, %c0_16], %20 {strides = array<i32>} : memref<8x32xf32, #tpu.memory_space<vmem>>, vector<8x32xf32>,
    } else {
    }
    %c0 = arith.constant 0 : index
    %c0_1 = arith.constant 0 : index
    %3 = vector.load %arg7[%c0, %c0_1] : memref<8x32xf32, #tpu.memory_space<vmem>>, vector<8x32xf32>
    %c0_2 = arith.constant 0 : index
    %c0_3 = arith.constant 0 : index
    %4 = vector.load %arg5[%c0_2, %c0_3] : memref<32x128xf32, #tpu.memory_space<vmem>>, vector<32x128xf32>
    %cst = arith.constant dense<0.000000e+00> : vector<8x128xf32>
    %5 = tpu.matmul %3, %4, %cst {dimension_numbers = #tpu.dot_dimension_numbers<[1], [0], [0], [1], [0, 0, 1, 1], [], []>} : vector<8x32xf32>, vector<32x128xf32>, vector<8x128xf32> -> vector<8x128xf32>
    %c0_4 = arith.constant 0 : index
    %c0_5 = arith.constant 0 : index
    %6 = vector.load %arg6[%c0_4, %c0_5] : memref<8x128xf32, #tpu.memory_space<vmem>>, vector<8x128xf32>
    tpu.vector_store %arg6[%c0_4, %c0_5], %5 {strides = array<i32>} : memref<8x128xf32, #tpu.memory_space<vmem>>, vector<8x128xf32>,
    return
  }
  func.func @transform_0(%arg0: i32, %arg1: i32) -> (i32, i32) {
    %c0_i32 = arith.constant 0 : i32
    %c0_i32_0 = arith.constant 0 : i32
    return %arg0, %c0_i32 : i32, i32
  }
  func.func @transform_1(%arg0: i32, %arg1: i32) -> (i32, i32) {
    %c0_i32 = arith.constant 0 : i32
    %c0_i32_0 = arith.constant 0 : i32
    %c0_i32_1 = arith.constant 0 : i32
    return %c0_i32, %c0_i32_0 : i32, i32
  }
  func.func @transform_2(%arg0: i32, %arg1: i32) -> (i32, i32) {
    %c0_i32 = arith.constant 0 : i32
    %c0_i32_0 = arith.constant 0 : i32
    %c0_i32_1 = arith.constant 0 : i32
    return %c0_i32, %c0_i32_0 : i32, i32
  }
  func.func @transform_3(%arg0: i32, %arg1: i32) -> (i32, i32) {
    %c0_i32 = arith.constant 0 : i32
    %c0_i32_0 = arith.constant 0 : i32
    return %c0_i32, %arg1 : i32, i32
  }
  func.func @transform_4(%arg0: i32, %arg1: i32) -> (i32, i32) {
    %c0_i32 = arith.constant 0 : i32
    return %arg0, %arg1 : i32, i32
  }
}

</mosaic_0001>

<bundles_post_ra>
// kernel: tpu_custom_call.1
= control target key start
LH: loop header
LB: loop body
LE: loop exit
PB: predicated region body
PF: predicated region fallthrough
CT: control target
= control target key end

     0   :  { %s1235_s0 = inlined_call_operand.hbm [shape: f32[32,32], index: 0, kind: input, shape index: {}]   ;;  %s1236_s1 = inlined_call_operand.hbm [shape: f32[32,32], index: 1, kind: input, shape index: {}]   ;;  %s1237_s2 = inlined_call_operand.vmem [shape: f32[1,32], index: 2, kind: input, shape index: {}]   ;;  %s1238_s3 = inlined_call_operand.hbm [shape: f32[32,256], index: 3, kind: input, shape index: {}]   ;;  %s1239_s4 = inlined_call_operand.hbm [shape: f32[32,256], index: 4, kind: output, shape index: {}]  }
   0x1   :  { %1249 = sst [smem:[#allocation24_spill]] %s1235_s0 }
   0x2   :  { %1250 = sst [smem:[#allocation25_spill]] %s1236_s1 }
   0x3   :  { %1251 = sst [smem:[#allocation26_spill]] %s1239_s4 }
   0x4   :  { %9 = vsyncpa [#allocation4], 0 }
   0x5   :  { %11 = vsyncpa [#allocation4 + $0x1], 0 }
   0x6   :  { %12 = vsyncpa [#allocation7], 0 }
   0x7   :  { %13 = vsyncpa [#allocation5], 0 }
   0x8   :  { %15 = vsyncpa [#allocation5 + $0x1], 0  ;;  %s944_s15 = smov 0   ;;  %s946_s16 = smov 0  }
   0x9   :  { %s948_s17 = smov 0   ;;  %s950_s18 = smov 0  }
   0xa   :  { %s952_s19 = smov 0   ;;  %s954_s20 = smov 0  }
   0xb   :  { %s956_s21 = smov 0   ;;  %s958_s22 = smov 0  }
   0xc   :  { %s960_s23 = smov 0   ;;  %s962_s24 = smov 0  }
   0xd   :  { %s964_s25 = smov 0   ;;  %s966_s26 = smov 0  }
   0xe   :  { %s968_s27 = smov 0   ;;  %s970_s28 = smov 0  }
   0xf LB: > { %1252 = sst [smem:[#allocation14_spill]] %s861_s15  ;;  %s1013_s29 = sadd.s32 4294967295, %s913_s28   ;;  %s913_s28 = sphi %s970_s28, %s21_s28   ;;  %s909_s27 = sphi %s968_s27, %s1285_s27   ;;  %s905_s26 = sphi %s966_s26, %s1294_s26   ;;  %s901_s25 = sphi %s964_s25, %s1283_s25   ;;  %s897_s24 = sphi %s962_s24, %s1293_s24   ;;  %s893_s23 = sphi %s960_s23, %s1282_s23   ;;  %s889_s22 = sphi %s958_s22, %s1292_s22   ;;  %s885_s21 = sphi %s956_s21, %s1291_s21   ;;  %s881_s20 = sphi %s954_s20, %s1290_s20   ;;  %s877_s19 = sphi %s952_s19, %s1289_s19   ;;  %s873_s18 = sphi %s950_s18, %s1288_s18   ;;  %s869_s17 = sphi %s948_s17, %s1279_s17   ;;  %s865_s16 = sphi %s946_s16, %s1287_s16   ;;  %s861_s15 = sphi %s944_s15, %s1286_s15  }
  0x10   : > { %1253 = sst [smem:[#allocation15_spill]] %s869_s17  ;;  %s30_s5 = sadd.s32 1, %s905_s26 }
  0x11   : > { %1254 = sst [smem:[#allocation16_spill]] %s893_s23  ;;  %s33_s6 = sadd.s32 1, %s909_s27 }
  0x12   : > { %1255 = sst [smem:[#allocation17_spill]] %s909_s27  ;;  %p31_p0 = scmp.ge.s32.totalorder %s30_s5, 2 }
  0x13   : > { %s40_s7 = sadd.s32 1, %s893_s23  ;;  %p47_p1 = scmp.ne.s32.totalorder %s893_s23, %s889_s22 }
  0x14   : > { %p48_p2 = scmp.eq.s32.totalorder %s913_s28, 0  ;;  %s1296_s5 = smov (%p31_p0, %s30_s5), 0 }
  0x15   : > { %1256 = sst [smem:[#allocation18_spill]] %s1296_s5  ;;  %s1298_s6 = smov (!%p31_p0, %s33_s6), %s909_s27 }
  0x16   : > { %p1027_p3 = por %p48_p2, %p47_p1  ;;  %p53_p4 = scmp.ne.s32.totalorder %s889_s22, %s885_s21 }
  0x17   : > { %p35_p5 = scmp.ge.s32.totalorder %s1298_s6, 4  ;;  %p54_p6 = scmp.eq.s32.totalorder %s1013_s29, 0 }
  0x18   : > { %s105_s9 = ssub.s32 %s905_s26, %s1296_s5  ;;  %s108_s10 = sadd.s32 1, %s881_s20 }
  0x19   : > { %s1300_s6 = smov (%p35_p5, %s1298_s6), 0  ;;  %p1040_p7 = por %p54_p6, %p53_p4 }
  0x1a   : > { %1258 = sst [smem:[#allocation19_spill]] %s1300_s6  ;;  %p106_p8 = scmp.eq.s32.totalorder %s105_s9, 0 }
  0x1b   : > { %s37_s12 = ssub.s32 %s909_s27, %s1300_s6  ;;  %p115_p9 = scmp.ne.s32.totalorder %s881_s20, %s877_s19 }
  0x1c   : > { %p38_p10 = scmp.eq.s32.totalorder %s37_s12, 0  ;;  %p121_p11 = scmp.ne.s32.totalorder %s877_s19, %s873_s18 }
  0x1d   : > { %s1051_s13 = scalar_select %p106_p8, %s881_s20, %s108_s10  }
  0x1e   : > { %s1054_s14 = scalar_select %p38_p10, %s893_s23, %s40_s7  }
  0x1f   : > { %1260 = sst [smem:[#allocation20_spill]] %s1051_s13  ;;  %p1058_p12 = por %p115_p9, %p48_p2 }
  0x20   : > { %1261 = sst [smem:[#allocation21_spill]] %s1054_s14  ;;  %p1064_p13 = por %p121_p11, %p54_p6 }
  0x21   : > { %s133_s6 = sor.u32 %s105_s9, %s37_s12  ;;  %s136_s5 = sadd.s32 1, %s869_s17 }
  0x22   : > { %p134_p0 = scmp.eq.s32.totalorder %s133_s6, 0  ;;  %p146_p1 = scmp.ne.s32.totalorder %s869_s17, %s865_s16 }
  0x23   : > { %p147_p4 = scmp.eq.s32.totalorder %s1013_s29, 7  ;;  %p152_p5 = scmp.ne.s32.totalorder %s865_s16, %s861_s15 }
  0x24   : > { %s1075_s18 = scalar_select %p134_p0, %s869_s17, %s136_s5  }
  0x25   : > { %p1077_p2 = por %p147_p4, %p146_p1  ;;  %s1267_s10 = sadd.s32 4294967294, %s913_s28  }
  0x26   : > { %1264 = sst [smem:[#allocation22_spill]] %s1075_s18  ;;  %p153_p8 = scmp.eq.s32.totalorder %s1267_s10, 7 }
  0x27   : > { %s1265_s7 = scalar_select %p1077_p2, 1, 0 }
  0x28   : > { %p1083_p9 = por %p153_p8, %p152_p5  ;;  %p547_p10 = scmp.lt.s32.totalorder %s913_s28, 8 }
  0x29   : > { %1266 = sst [smem:[#allocation23_spill]] %s1265_s7  ;;  %s190_s6 = sand.u32 1, %s913_s28  }
  0x2a   : > { %s192_s9 = sand.u32 1, %s893_s23   ;;  %s505_s13 = sshll.u32 %s909_s27, 3 }
  0x2b   : > { %s504_s12 = sshll.u32 %s192_s9, 3  ;;  %s1269_s0 = sld [smem:[#allocation24_spill]] }
  0x2c   : > { %s194_s15 = scalar_lea.vmem [#allocation3], %s504_s12  ;;  %p536_p11 = pnand %p547_p10, %p1027_p3 }
  0x2d   : > { %s202_s4 = sshll.u32 %s194_s15, 4  ;;  %p1098_p0 = pnand %p547_p10, %p1058_p12  ;;  %s203_s4 = int_to_ptr.vmem [resolvable:$true] %s202_s4 }
  0x2e   : > { %s1102_s9 = scalar_lea.sflag [#allocation4], %s190_s6  ;;  %p501_p1 = scmp.ge.s32.totalorder %s913_s28, 1 }
  0x2f   : > { %p160_p4 = scmp.lt.s32.totalorder %s913_s28, 9  ;;  %s1271_s1 = sld [smem:[#allocation25_spill]] }
  0x30   : > { %s915_s21 = smov [#allocation6]   ;;  %s918_s23 = smov 256  }
  0x31   : > { %s198_s17 = scalar_lea.hbm %s1269_s0, %s505_s13  ;;  %p1110_p5 = pnand %p501_p1, %p160_p4 }
  0x32   : > { %s200_s7 = sshll.u32 %s198_s17, 4  ;;  %s173_s18 = sshll.u32 %s915_s21, 4  ;;  %s201_s7 = int_to_ptr.hbm [resolvable:$true] %s200_s7  ;;  %s174_s18 = int_to_ptr.vmem [resolvable:$true] %s173_s18 }
  0x33   : > { %538 = dma.hbm_to_vmem [thread:$0]  (!%p536_p11), %s201_s7, 128, %s203_s4, %s1102_s9  }
  0x34   : > { %p531_p3 = pneg %p1110_p5  ;;  %s211_s4 = sand.u32 1, %s881_s20  }
  0x35   : > { %s171_s13 = sshll.u32 %s1271_s1, 4  ;;  %s507_s7 = sshll.u32 %s905_s26, 3  ;;  %s172_s13 = int_to_ptr.hbm [resolvable:$true] %s171_s13 }
  0x36   : > { %p532_p12 = pnand %p531_p3, %p54_p6  ;;  %s506_s6 = sshll.u32 %s211_s4, 5 }
  0x37   : > { %s217_s15 = scalar_lea.hbm %s1238_s3, %s507_s7  ;;  %s916_s0 = smov 128  }
  0x38   : > { %s218_s17 = sshll.u32 %s217_s15, 4  ;;  %s917_s1 = smov 8   ;;  %s219_s17 = int_to_ptr.hbm [resolvable:$true] %s218_s17 }
  0x39   : > { %534 = dma.hbm_to_vmem [thread:$0]  (!%p532_p12), %s172_s13, 512, %s174_s18, [#allocation7], %s916_s0, %s916_s0, %s917_s1  }
  0x3a   : > { %s213_s21 = scalar_lea.vmem [#allocation8], %s506_s6  ;;  %232 = sbr.rel (%p1110_p5) target bundleno = 493 (0x1ed), region = 36 }
  0x3b   : > { %s220_s27 = sshll.u32 %s213_s21, 4  ;;  %s234_s4 = sand.u32 (!%p1110_p5), 1, %s1013_s29   ;;  %s221_s27 = int_to_ptr.vmem [resolvable:$true] %s220_s27 }
  0x3c   : > { %541 = dma.hbm_to_vmem [thread:$0]  (!%p1098_p0), %s219_s17, 512, %s221_s27, %s1102_s9, %s918_s23, %s916_s0, %s917_s1  }
  0x3d   : > { %s236_s12 = sand.u32 (!%p1110_p5), 1, %s889_s22   ;;  %s235_s5 = scalar_lea.sflag (!%p1110_p5), [#allocation4], %s234_s4 }
  0x3e   : > { %s509_s7 = sshll.u32 (!%p1110_p5), %s236_s12, 3 }
  0x3f   : > { %s238_s15 = scalar_lea.vmem [#allocation3], %s509_s7 }
  0x40   : > { %844 = dma.done.wait (%p1040_p7), %s235_s5, 128  }
  0x41   : > { %846 = vsyncadd (%p1040_p7), %s235_s5, 4294967168 }
  0x42   : > { %848 = dma.done.wait (%p54_p6), [#allocation7], 512  }
  0x43   : > { %850 = vsyncadd (%p54_p6), [#allocation7], 4294966784  ;;  %s251_s0 = sand.u32 1, %s877_s19  }
  0x44   : > { %s511_s1 = sshll.u32 %s251_s0, 5 }
  0x45   : > { %s1139_s23 = scalar_lea.vmem [#allocation8], %s511_s1 }
  0x46   : > { %852 = dma.done.wait (%p1064_p13), %s235_s5, 512  }
  0x47   : > { %854 = vsyncadd (%p1064_p13), %s235_s5, 4294966784  ;;  %s281_s27 = sand.u32 1, %s865_s16   ;;  %p513_p6 = scmp.ne.s32.totalorder %s897_s24, 0 }
  0x48   : > { %s1148_s11 = sshll.u32 %s281_s27, 3 }
  0x49   : > { %s283_s29 = scalar_lea.vmem [#allocation9], %s1148_s11  ;;  %287 = sbr.rel (%p513_p6) target bundleno = 356 (0x164), region = 52 }
  0x4e   : > { %v292_v0 = vld [vmem:[#allocation6 + $0x18] sm:$0xff]  ;;  %v291_v1 = vld [vmem:[#allocation6 + $0x10] sm:$0xff]  ;;  %v290_v2 = vld [vmem:[#allocation6 + $0x8] sm:$0xff]  ;;  %vm297_vm0 = vcmask 261120  }
  0x4f   : > { %313 = vmatpush.msra.mxu0 %v292_v0  ;;  %v289_v3 = vld [vmem:[#allocation6] sm:$0xff]  ;;  %v288_v4 = vld [vmem:[%s238_s15] sm:$0xff]  ;;  %v666_v5 = vld [vmem:[%s1237_s2] ss:$0 sm:$0xff] }
  0x51   : > { %314 = vmatpush.msra.mxu0 %v291_v1 }
  0x53   : > { %315 = vmatpush.msra.mxu0 %v290_v2 }
  0x55   : > { %316 = vmatpush.msra.mxu0 %v289_v3 }
  0x56   : > { %514 = vmatmul.msk.f32.vlgmr.msra.gmra.mxu0 %vm297_vm0, %v288_v4 }
  0xd3   : > { %v318_v6 = vpop.f32.mrf.mxu0 }
  0xd4   : > { %v319_v7 = vadd.f32 %v666_v5, %v318_v6 }
  0xd6   : > { %v321_v8 = vmul.f32 %v319_v7, %v319_v7 }
  0xd8   : > { %v322_v9 = vsel %vm297_vm0, %v321_v8, 0.0 }
  0xd9   : > { %323 = vadd.xlane.f32.xlu0 %v322_v9 }
 0x14c   : > { %v324_v10 = vpop.xlane.xlu0 %323 }
 0x14d   : > { %v325_v11 = vmax.f32 %v324_v10, 1e-24 }
 0x14f   : > { %667 = vrsqrt.f32 %v325_v11  ;;  %vm332_vm2 = vweird.f32 %v325_v11 }
 0x155   : > { %v668_v12 = vpop.eup %667 }
 0x156   : > { %v327_v13 = vmul.f32 %v668_v12, %v325_v11  ;;  %vm333_vm1 = vweird.f32 %v668_v12 }
 0x157   : > { %vm334_vm3 = vmor %vm332_vm2, %vm333_vm1 }
 0x158   : > { %v328_v14 = vmul.f32 %v668_v12, %v327_v13 }
 0x15a   : > { %v329_v15 = vmul.f32 0.5, %v328_v14 }
 0x15c   : > { %v330_v16 = vsub.f32 1.5, %v329_v15 }
 0x15e   : > { %v331_v17 = vmul.f32 %v668_v12, %v330_v16 }
 0x160   : > { %v335_v18 = vsel %vm334_vm3, %v668_v12, %v331_v17 }
 0x161   : > { %v336_v19 = vmul.f32 %v335_v18, %v319_v7 }
 0x163   : > { %337 = vst.msk [vmem:[#allocation2] sm:$0xff] %vm297_vm0, %v336_v19 }
 0x164 PF: > { %v342_v20 = vld [vmem:[%s1139_s23 + $0x18] sm:$0xff]  ;;  %v341_v21 = vld [vmem:[%s1139_s23 + $0x10] sm:$0xff]  ;;  %v340_v22 = vld [vmem:[%s1139_s23 + $0x8] sm:$0xff]  ;;  %vm343_vm4 = vcmask 261120   ;;  %s517_s13 = sshll.u32 %s901_s25, 1  ;;  %s1274_s21 = sld [smem:[#allocation26_spill]] }
 0x165   : > { %359 = vmatpush.msra.mxu0 %v342_v20  ;;  %v339_v23 = vld [vmem:[%s1139_s23] sm:$0xff]  ;;  %s379_s8 = sadd.s32 %s897_s24, %s517_s13  ;;  %s383_s7 = sshll.u32 %s283_s29, 4  ;;  %s384_s7 = int_to_ptr.vmem [resolvable:$true] %s383_s7 }
 0x166   : > { %s518_s18 = sshll.u32 %s379_s8, 3  ;;  %s369_s15 = scalar_lea.sflag [#allocation5], %s281_s27 }
 0x167   : > { %360 = vmatpush.msra.mxu0 %v341_v21 }
 0x169   : > { %361 = vmatpush.msra.mxu0 %v340_v22 }
 0x16a   : > { %v338_v24 = vld [vmem:[#allocation2] sm:$0xff]  ;;  %s1275_s4 = smov %s1274_s21  ;;  %s381_s12 = scalar_lea.hbm %s1274_s21, %s518_s18 }
 0x16b   : > { %362 = vmatpush.msra.mxu0 %v339_v23  ;;  %s385_s5 = sshll.u32 %s381_s12, 4  ;;  %s779_s23 = scalar_lea.hbm %s1275_s4, 64  ;;  %s386_s5 = int_to_ptr.hbm [resolvable:$true] %s385_s5 }
 0x16c   : > { %515 = vmatmul.msk.f32.vlgmr.msra.gmra.mxu0 %vm343_vm4, %v338_v24  ;;  %s773_s0 = sshra.s32 %s386_s5, 4  ;;  %s774_s0 = int_to_ptr.hbm [resolvable:$true] %s773_s0 }
 0x16d   : > { %s775_s1 = scalar_lea.hbm %s774_s0, 8  ;;  %p780_p10 = scmp.lt.s32.totalorder %s774_s0, %s1275_s4 }
 0x16e   : > { %p776_p7 = scmp.ne.s32.totalorder %s774_s0, %s775_s1  ;;  %p781_p11 = scmp.lt.s32.totalorder %s779_s23, %s775_s1 }
 0x170   : > { %p777_p13 = pnand %p776_p7, %p1077_p2  ;;  %p782_p0 = por %p781_p11, %p780_p10 }
 0x172   : > { %p778_p8 = pneg %p777_p13 }
 0x174   : > { %p783_p1 = pnand %p782_p0, %p778_p8 }
 0x1e9   : > { %v364_v25 = vpop.f32.mrf.mxu0 }
 0x1ea   : > { %367 = vst [vmem:[%s283_s29] sm:$0xff] %v364_v25 }
 0x1eb   : > { %786 = shalt.err (!%p783_p1)
}
 0x1ec   : > { %529 = dma.vmem_to_hbm [thread:$0]  (%p1077_p2), %s384_s7, 128, %s386_s5, %s369_s15  }
 0x1ed PF: > { %s1276_s27 = sld [smem:[#allocation14_spill]]  ;;  %p549_p4 = scmp.ge.s32.totalorder %s913_s28, 2 }
 0x1ef   : > { %p543_p5 = pnand %p549_p4, %p1083_p9 }
 0x1f1   : > { %p544_p3 = pneg %p543_p5 }
 0x1f3   : > { %s397_s11 = sand.u32 1, %s1276_s27  }
 0x1f4   : > { %s398_s29 = scalar_lea.sflag [#allocation5], %s397_s11 }
 0x1f5   : > { %856 = dma.done.wait (%p544_p3), %s398_s29, 128  }
 0x1f6   : > { %858 = vsyncadd (%p544_p3), %s398_s29, 4294967168  ;;  %s21_s28 = sadd.s32 1, %s913_s28   ;;  %s1278_s9 = sld [smem:[#allocation15_spill]] }
 0x1f7   : > { %p1188_p12 = scmp.ge.s32.totalorder %s21_s28, 10   ;;  %s1279_s17 = sld [smem:[#allocation22_spill]] }
 0x1f8   : > { %s1280_s8 = sld [smem:[#allocation20_spill]]  ;;  %s1286_s15 = smov %s865_s16 }
 0x1f9   : > { %s1281_s6 = sld [smem:[#allocation16_spill]]  ;;  %s1288_s18 = smov %s877_s19 }
 0x1fa   : > { %s1282_s23 = sld [smem:[#allocation21_spill]]  ;;  %s1289_s19 = smov %s881_s20 }
 0x1fb   : > { %s1283_s25 = sld [smem:[#allocation17_spill]]  ;;  %s1291_s21 = smov %s889_s22 }
 0x1fc   : > { %s1284_s14 = sld [smem:[#allocation18_spill]]  ;;  %s1287_s16 = smov %s1278_s9 }
 0x1fd   : > { %s1285_s27 = sld [smem:[#allocation19_spill]]  ;;  %s1293_s24 = smov %s905_s26 }
 0x1fe   : > { %s1290_s20 = smov %s1280_s8  ;;  %20 = sbr.rel (!%p1188_p12) target bundleno = 15 (0xf), region = 100 }
 0x1ff   : > { %s1292_s22 = smov %s1281_s6 }
 0x202   : > { %s1294_s26 = smov %s1284_s14 }
 0x203   :  { %404 = vsyncpa [#allocation4], 1 }
 0x204   :  { %406 = vsyncpa [#allocation4 + $0x1], 1 }
 0x205   :  { %407 = vsyncpa [#allocation7], 1 }
 0x206   :  { %408 = vsyncpa [#allocation5], 1 }
 0x207   :  { %410 = vsyncpa [#allocation5 + $0x1], 1 }

</bundles_post_ra>
